<compile_context>
chip_gen: v5e
topology: v5e:2x2
jax: 0.10.0
libtpu: 0.0.40
codegen_flags: <defaults>
</compile_context>

<pallas_src>
import jax
import jax.numpy as jnp
from jax.experimental import pallas as pl
from jax.experimental.pallas import tpu as pltpu


# ----------------------------------------------------------------------------
# tile / budget helpers
# ----------------------------------------------------------------------------
_ROW_TILES = (1024, 512, 256, 128, 64, 32, 16, 8)
_HW_TILES = (65536, 32768, 16384, 8192, 4096, 2048, 1024, 512, 256, 128)


def _pick_tile(n, candidates):
    for t in candidates:
        if t <= n and n % t == 0:
            return t
    return n  # full extent (block == full array dim is always legal)


def _vmem_limit_bytes():
    # v5e/v6e: 128 MiB VMEM per core; v7x: 64 MiB.  Use ~3/4 of physical,
    # capped at 100 MiB; fall back to a v7x-safe 48 MiB if the query fails.
    try:
        cap = getattr(pltpu.get_tpu_info(), "vmem_capacity_bytes", None)
        if cap:
            return int(min(cap * 3 // 4, 100 * 1024 * 1024))
    except Exception:
        pass
    return 48 * 1024 * 1024


def _fold_factor(c2):
    # Smallest k with (k * c2) % 128 == 0, so the expand output store is
    # lane-dense (unmasked vst).  k == 1 whenever 2*dim is already a multiple
    # of 128 (typical production dims).
    k = 1
    while (k * c2) % 128 != 0:
        k += 1
    return k


# ----------------------------------------------------------------------------
# Kernel 1: expand Linear(dim -> 2*dim, no bias) fused with grouped LayerNorm.
#   x:     (tile_m, Din)   f32   (cast to bf16 in-kernel, right before the dot)
#   w:     (Din, F)        bf16  resident (constant index_map)
#   seg:   (F, G)          f32   one-hot group-sum matrix (feature -> group)
#   segtg: (G, F)          f32   broadcast-back matrix pre-scaled by LN gamma
#   beta:  (1, F)          f32   LN beta tiled over the G groups
#   o:     (tile_m, F)     bf16  lane-dense (F is a multiple of 128 via fold)
# Group statistics use tiny K/N=G one-hot matmuls -> no cross-lane relayout.
# ----------------------------------------------------------------------------
def expand_ln_kernel(x_ref, w_ref, seg_ref, segtg_ref, beta_ref, o_ref):
    x = x_ref[...].astype(w_ref.dtype)                    # free VPU cast vs DMA
    y = jnp.dot(x, w_ref[...], preferred_element_type=jnp.float32)  # (tm, F) f32
    f_dim = y.shape[1]
    g_dim = seg_ref.shape[1]
    inv_c = 1.0 / (f_dim // g_dim)
    seg = seg_ref[...]
    mean_g = jnp.dot(y, seg, preferred_element_type=jnp.float32) * inv_c      # (tm, G)
    msq_g = jnp.dot(y * y, seg, preferred_element_type=jnp.float32) * inv_c   # (tm, G)
    # var = E[y^2] - mean^2 in f32; eps matches nn.LayerNorm default.
    rstd_g = jax.lax.rsqrt(msq_g - mean_g * mean_g + 1e-5)
    segtg = segtg_ref[...]
    scale = jnp.dot(rstd_g, segtg, preferred_element_type=jnp.float32)        # rstd*gamma
    shift = jnp.dot(mean_g * rstd_g, segtg, preferred_element_type=jnp.float32)
    o_ref[...] = (y * scale - shift + beta_ref[...]).astype(o_ref.dtype)


def expand_ln(x_fold, w_fold, seg, segtg, beta_t, *, tile_m=None, vmem_limit=None):
    rows, din = x_fold.shape
    f_dim = w_fold.shape[1]
    g_dim = seg.shape[1]
    if tile_m is None:
        tile_m = _pick_tile(rows, _ROW_TILES)
    assert rows % tile_m == 0, (rows, tile_m)
    if vmem_limit is None:
        vmem_limit = _vmem_limit_bytes()
    return pl.pallas_call(
        expand_ln_kernel,
        out_shape=jax.ShapeDtypeStruct((rows, f_dim), jnp.bfloat16),
        grid=(rows // tile_m,),
        in_specs=[
            pl.BlockSpec((tile_m, din), lambda i: (i, 0)),
            # Resident operands (constant index_map -> fetched once).
            # TODO(synk): on v7x, pipeline_mode=pl.Buffered(1) on these would
            # skip double-buffering the resident weight and save VMEM at
            # large dim; omitted here to keep lowering maximally portable.
            pl.BlockSpec((din, f_dim), lambda i: (0, 0)),
            pl.BlockSpec((f_dim, g_dim), lambda i: (0, 0)),
            pl.BlockSpec((g_dim, f_dim), lambda i: (0, 0)),
            pl.BlockSpec((1, f_dim), lambda i: (0, 0)),
        ],
        out_specs=pl.BlockSpec((tile_m, f_dim), lambda i: (i, 0)),
        compiler_params=pltpu.CompilerParams(
            dimension_semantics=("parallel",),
            vmem_limit_bytes=vmem_limit),
    )(x_fold, w_fold, seg, segtg, beta_t)


# ----------------------------------------------------------------------------
# Kernel 2: 1x1 ConvTranspose2d, channel-major (B, Cin, H*W) -> (B, Cout, H*W).
#   x: (1, Cin, tile_hw) bf16   w: (Cout, Cin) f32 VMEM   b: (Cout, 1) f32 VMEM
# Channel mix as one small MXU dot on the full lane-dense slab (no per-channel
# single-sublane slices); H*W stays the lane axis -> unmasked stores.
# ----------------------------------------------------------------------------
def deconv1x1_kernel(x_ref, w_ref, b_ref, o_ref):
    x = x_ref[0].astype(jnp.float32)                              # (Cin, T)
    y = jnp.dot(w_ref[...], x, preferred_element_type=jnp.float32)  # (Cout, T)
    o_ref[0] = (y + b_ref[...]).astype(o_ref.dtype)


def deconv1x1(x_cm, wt, b, *, tile_hw=None, vmem_limit=None):
    bsz, cin, hw = x_cm.shape
    cout = wt.shape[0]
    if tile_hw is None:
        tile_hw = _pick_tile(hw, _HW_TILES)
    assert hw % tile_hw == 0, (hw, tile_hw)
    if vmem_limit is None:
        vmem_limit = _vmem_limit_bytes()
    return pl.pallas_call(
        deconv1x1_kernel,
        out_shape=jax.ShapeDtypeStruct((bsz, cout, hw), jnp.float32),
        grid=(bsz, hw // tile_hw),
        in_specs=[
            pl.BlockSpec((1, cin, tile_hw), lambda bi, ti: (bi, 0, ti)),
            pl.BlockSpec((cout, cin), lambda bi, ti: (0, 0)),
            pl.BlockSpec((cout, 1), lambda bi, ti: (0, 0)),
        ],
        out_specs=pl.BlockSpec((1, cout, tile_hw), lambda bi, ti: (bi, 0, ti)),
        compiler_params=pltpu.CompilerParams(
            dimension_semantics=("parallel", "parallel"),
            vmem_limit_bytes=vmem_limit),
    )(x_cm, wt, b)


# ----------------------------------------------------------------------------
# One-time parameter preparation (transposes / tiling / fold / seg matrices).
# ----------------------------------------------------------------------------
def prepare_params(params, *, dim):
    c = dim // 2
    c2 = 2 * dim
    k = _fold_factor(c2)          # lane-density fold (k == 1 when 2*dim % 128 == 0)
    g_dim = 4 * k
    f_dim = k * c2

    wT = jnp.asarray(params["w_expand"], jnp.float32).T            # (dim, 2*dim)
    if k > 1:
        # blockdiag(wT, ..., wT): folds k token rows into one lane-dense row.
        # Only triggered when 2*dim < 128, so the extra (mostly-zero) FLOPs
        # and weight bytes are negligible.
        w_fold = jnp.kron(jnp.eye(k, dtype=jnp.float32), wT)       # (k*dim, k*2*dim)
    else:
        w_fold = wT

    gamma_t = jnp.tile(jnp.asarray(params["ln_gamma"], jnp.float32), g_dim)        # (F,)
    beta_t = jnp.tile(jnp.asarray(params["ln_beta"], jnp.float32), g_dim)[None, :]  # (1, F)
    f = jnp.arange(f_dim)
    seg = (f[:, None] // c == jnp.arange(g_dim)[None, :]).astype(jnp.float32)  # (F, G)
    segtg = seg.T * gamma_t[None, :]                                           # (G, F)

    w_deconv = jnp.asarray(params["w_deconv"], jnp.float32)        # (cin, cout)
    return dict(
        w_fold=w_fold.astype(jnp.bfloat16),
        seg=seg, segtg=segtg, beta_t=beta_t,
        wt_deconv=w_deconv.T,                                      # (cout, cin) f32 (tiny)
        b_deconv=jnp.asarray(params["b_deconv"], jnp.float32)[:, None],  # (cout, 1)
    )


# ----------------------------------------------------------------------------
# Full Deconv_Token forward (Pallas hot paths + one XLA index-shuffle in bf16).
# ----------------------------------------------------------------------------
def deconv_token_forward(x, prep, *, res, dim, in_chans, out_chans,
                         img_size, patch_size, tile_m=None, tile_hw=None):
    B, L, C = x.shape
    assert L == res * res and C == dim
    p = img_size // patch_size
    assert dim // 2 == p * p
    assert 4 * L == patch_size * patch_size * in_chans

    k = _fold_factor(2 * dim)
    BL = B * L
    assert BL % k == 0, (BL, k)
    assert prep["w_fold"].shape == (k * dim, k * 2 * dim)

    # ---- PatchExpand: Linear(dim -> 2*dim, no bias) + grouped LayerNorm.
    # Row folding is a free contiguous view; keeps the store lane-dense.
    x_fold = x.reshape(BL // k, k * dim)
    yn = expand_ln(x_fold, prep["w_fold"], prep["seg"], prep["segtg"],
                   prep["beta_t"], tile_m=tile_m)      # (BL/k, k*2*dim) bf16

    # ---- pixel-shuffle + token2img as one reshape/transpose chain (bf16).
    # TODO(synk): the mixed-radix reshape between the two transposes prevents
    # collapsing to a single copy / fusing into the expand kernel's writeback
    # without an element-granularity DMA scatter; left as XLA glue (half the
    # bytes now that the intermediate is bf16).
    y = yn.reshape(B, res, res, 2, 2, p, p)            # b, h, w, p1, p2, q1, q2
    y = jnp.transpose(y, (0, 1, 3, 2, 4, 5, 6))        # b, h, p1, w, p2, q1, q2
    y = y.reshape(B, patch_size, patch_size, in_chans, p, p)  # b, hp, wp, ch, q1, q2
    y = jnp.transpose(y, (0, 3, 4, 1, 5, 2))           # b, ch, q1, hp, q2, wp
    img = y.reshape(B, in_chans, img_size * img_size)  # channel-major, bf16

    # ---- 1x1 ConvTranspose2d: channel mix over the lane-dense H*W axis.
    out = deconv1x1(img, prep["wt_deconv"], prep["b_deconv"], tile_hw=tile_hw)
    return out.reshape(B, out_chans, img_size, img_size)      # NCHW, f32


# ----------------------------------------------------------------------------
# Pure-JAX f32 reference (mirrors the PyTorch module exactly).
# ----------------------------------------------------------------------------
def reference_forward(x, params, *, res, dim, in_chans, out_chans,
                      img_size, patch_size):
    B, L, C = x.shape
    y = x @ params["w_expand"].T                  # (B, L, 2*dim)
    c = dim // 2
    y = y.reshape(B, res, res, 2, 2, c)
    y = jnp.transpose(y, (0, 1, 3, 2, 4, 5)).reshape(B, 4 * res * res, c)
    mean = y.mean(-1, keepdims=True)
    var = ((y - mean) ** 2).mean(-1, keepdims=True)
    y = (y - mean) / jnp.sqrt(var + 1e-5) * params["ln_gamma"] + params["ln_beta"]
    p = img_size // patch_size
    y = y.reshape(B, patch_size, patch_size, in_chans, p, p)
    y = jnp.transpose(y, (0, 3, 4, 1, 5, 2)).reshape(B, in_chans, img_size, img_size)
    out = jnp.einsum("bihw,io->bohw", y, params["w_deconv"]) \
        + params["b_deconv"][None, :, None, None]
    return out


if __name__ == "__main__":
    # Shapes consistent with Deconv_Token constraints:
    #   4*res*res == patch_size**2 * in_chans ; dim//2 == (img_size//patch_size)**2
    B, res, dim = 2, 4, 32
    in_chans, out_chans = 4, 4
    img_size, patch_size = 16, 4

    key = jax.random.PRNGKey(0)
    kx, kw, kg, kb, kd, kdb = jax.random.split(key, 6)

    x = jax.random.normal(kx, (B, res * res, dim), dtype=jnp.float32)

    params = {
        # nn.Linear(dim, 2*dim, bias=False): weight (2*dim, dim)
        "w_expand": jax.random.normal(kw, (2 * dim, dim), dtype=jnp.float32) * 0.05,
        # nn.LayerNorm(dim // 2)
        "ln_gamma": 1.0 + 0.1 * jax.random.normal(kg, (dim // 2,), dtype=jnp.float32),
        "ln_beta": 0.1 * jax.random.normal(kb, (dim // 2,), dtype=jnp.float32),
        # nn.ConvTranspose2d(in_chans, out_chans, 1): weight (in, out, 1, 1) -> (in, out)
        "w_deconv": jax.random.normal(kd, (in_chans, out_chans), dtype=jnp.float32) * 0.2,
        "b_deconv": 0.05 * jax.random.normal(kdb, (out_chans,), dtype=jnp.float32),
    }

    cfg = dict(res=res, dim=dim, in_chans=in_chans, out_chans=out_chans,
               img_size=img_size, patch_size=patch_size)

    prep = prepare_params(params, dim=dim)

    # Small tiles so the toy shapes still exercise multi-step pipelined grids:
    # folded rows = 32/2 = 16 -> 2 row tiles; HW = 256 -> 2 spatial tiles.
    fwd = jax.jit(lambda xx, pp: deconv_token_forward(
        xx, pp, tile_m=8, tile_hw=128, **cfg))

    out = jax.block_until_ready(fwd(x, prep))

    ref = reference_forward(x, params, **cfg)
    assert out.shape == (B, out_chans, img_size, img_size), out.shape
    # bf16 matmul weights + bf16 intermediate -> loosened tolerance vs f32 ref.
    assert jnp.allclose(out, ref, atol=5e-2, rtol=5e-2), \
        float(jnp.max(jnp.abs(out - ref)))

    print("KERNEL_OK")
</pallas_src>

<mosaic_0001>
module attributes {stable_mosaic.version = 11 : i64} {
  func.func @expand_ln_kernel(%arg0: i32, %arg1: memref<8x64xf32, #tpu.memory_space<vmem>>, %arg2: memref<64x128xbf16, #tpu.memory_space<vmem>>, %arg3: memref<128x8xf32, #tpu.memory_space<vmem>>, %arg4: memref<8x128xf32, #tpu.memory_space<vmem>>, %arg5: memref<1x128xf32, #tpu.memory_space<vmem>>, %arg6: memref<8x128xbf16, #tpu.memory_space<vmem>>) attributes {dimension_semantics = [#tpu.dimension_semantics<parallel>], iteration_bounds = array<i64: 2>, scalar_prefetch = 0 : i64, scratch_operands = 0 : i64, tpu.core_type = #tpu.core_type<tc>, window_params = [{transform_indices = @transform_0, window_bounds = array<i64: 8, 64>}, {pipeline_mode = #tpu.pipeline_mode<synchronous>, transform_indices = @transform_1, window_bounds = array<i64: 64, 128>}, {pipeline_mode = #tpu.pipeline_mode<synchronous>, transform_indices = @transform_2, window_bounds = array<i64: 128, 8>}, {pipeline_mode = #tpu.pipeline_mode<synchronous>, transform_indices = @transform_3, window_bounds = array<i64: 8, 128>}, {pipeline_mode = #tpu.pipeline_mode<synchronous>, transform_indices = @transform_4, window_bounds = array<i64: 1, 128>}, {transform_indices = @transform_5, window_bounds = array<i64: 8, 128>}]} {
    %c0 = arith.constant 0 : index
    %c0_0 = arith.constant 0 : index
    %0 = vector.load %arg1[%c0, %c0_0] : memref<8x64xf32, #tpu.memory_space<vmem>>, vector<8x64xf32>
    %1 = arith.truncf %0 : vector<8x64xf32> to vector<8x64xbf16>
    %c0_1 = arith.constant 0 : index
    %c0_2 = arith.constant 0 : index
    %2 = vector.load %arg2[%c0_1, %c0_2] : memref<64x128xbf16, #tpu.memory_space<vmem>>, vector<64x128xbf16>
    %cst = arith.constant dense<0.000000e+00> : vector<8x128xf32>
    %3 = tpu.matmul %1, %2, %cst {dimension_numbers = #tpu.dot_dimension_numbers<[1], [0], [0], [1], [0, 0, 1, 1], [], []>} : vector<8x64xbf16>, vector<64x128xbf16>, vector<8x128xf32> -> vector<8x128xf32>
    %c0_3 = arith.constant 0 : index
    %c0_4 = arith.constant 0 : index
    %4 = vector.load %arg3[%c0_3, %c0_4] : memref<128x8xf32, #tpu.memory_space<vmem>>, vector<128x8xf32>
    %cst_5 = arith.constant dense<0.000000e+00> : vector<8x8xf32>
    %5 = tpu.matmul %3, %4, %cst_5 {dimension_numbers = #tpu.dot_dimension_numbers<[1], [0], [0], [1], [0, 0, 1, 1], [], []>} : vector<8x128xf32>, vector<128x8xf32>, vector<8x8xf32> -> vector<8x8xf32>
    %cst_6 = arith.constant 6.250000e-02 : f32
    %6 = vector.broadcast %cst_6 : f32 to vector<8x8xf32>
    %7 = arith.mulf %5, %6 : vector<8x8xf32>
    %8 = arith.mulf %3, %3 : vector<8x128xf32>
    %cst_7 = arith.constant dense<0.000000e+00> : vector<8x8xf32>
    %9 = tpu.matmul %8, %4, %cst_7 {dimension_numbers = #tpu.dot_dimension_numbers<[1], [0], [0], [1], [0, 0, 1, 1], [], []>} : vector<8x128xf32>, vector<128x8xf32>, vector<8x8xf32> -> vector<8x8xf32>
    %cst_8 = arith.constant 6.250000e-02 : f32
    %10 = vector.broadcast %cst_8 : f32 to vector<8x8xf32>
    %11 = arith.mulf %9, %10 : vector<8x8xf32>
    %12 = arith.mulf %7, %7 : vector<8x8xf32>
    %13 = arith.subf %11, %12 : vector<8x8xf32>
    %cst_9 = arith.constant 9.99999974E-6 : f32
    %14 = vector.broadcast %cst_9 : f32 to vector<8x8xf32>
    %15 = arith.addf %13, %14 : vector<8x8xf32>
    %16 = math.rsqrt %15 : vector<8x8xf32>
    %c0_10 = arith.constant 0 : index
    %c0_11 = arith.constant 0 : index
    %17 = vector.load %arg4[%c0_10, %c0_11] : memref<8x128xf32, #tpu.memory_space<vmem>>, vector<8x128xf32>
    %cst_12 = arith.constant dense<0.000000e+00> : vector<8x128xf32>
    %18 = tpu.matmul %16, %17, %cst_12 {dimension_numbers = #tpu.dot_dimension_numbers<[1], [0], [0], [1], [0, 0, 1, 1], [], []>} : vector<8x8xf32>, vector<8x128xf32>, vector<8x128xf32> -> vector<8x128xf32>
    %19 = arith.mulf %7, %16 : vector<8x8xf32>
    %cst_13 = arith.constant dense<0.000000e+00> : vector<8x128xf32>
    %20 = tpu.matmul %19, %17, %cst_13 {dimension_numbers = #tpu.dot_dimension_numbers<[1], [0], [0], [1], [0, 0, 1, 1], [], []>} : vector<8x8xf32>, vector<8x128xf32>, vector<8x128xf32> -> vector<8x128xf32>
    %21 = arith.mulf %3, %18 : vector<8x128xf32>
    %22 = arith.subf %21, %20 : vector<8x128xf32>
    %c0_14 = arith.constant 0 : index
    %c0_15 = arith.constant 0 : index
    %23 = vector.load %arg5[%c0_14, %c0_15] : memref<1x128xf32, #tpu.memory_space<vmem>>, vector<1x128xf32>
    %24 = vector.broadcast %23 : vector<1x128xf32> to vector<8x128xf32>
    %25 = arith.addf %22, %24 : vector<8x128xf32>
    %26 = arith.truncf %25 : vector<8x128xf32> to vector<8x128xbf16>
    %c0_16 = arith.constant 0 : index
    %c0_17 = arith.constant 0 : index
    %27 = vector.load %arg6[%c0_16, %c0_17] : memref<8x128xbf16, #tpu.memory_space<vmem>>, vector<8x128xbf16>
    tpu.vector_store %arg6[%c0_16, %c0_17], %26 {strides = array<i32>} : memref<8x128xbf16, #tpu.memory_space<vmem>>, vector<8x128xbf16>,
    return
  }
  func.func @transform_0(%arg0: i32) -> (i32, i32) {
    %c0_i32 = arith.constant 0 : i32
    %c0_i32_0 = arith.constant 0 : i32
    return %arg0, %c0_i32 : i32, i32
  }
  func.func @transform_1(%arg0: i32) -> (i32, i32) {
    %c0_i32 = arith.constant 0 : i32
    %c0_i32_0 = arith.constant 0 : i32
    %c0_i32_1 = arith.constant 0 : i32
    return %c0_i32, %c0_i32_0 : i32, i32
  }
  func.func @transform_2(%arg0: i32) -> (i32, i32) {
    %c0_i32 = arith.constant 0 : i32
    %c0_i32_0 = arith.constant 0 : i32
    %c0_i32_1 = arith.constant 0 : i32
    return %c0_i32, %c0_i32_0 : i32, i32
  }
  func.func @transform_3(%arg0: i32) -> (i32, i32) {
    %c0_i32 = arith.constant 0 : i32
    %c0_i32_0 = arith.constant 0 : i32
    %c0_i32_1 = arith.constant 0 : i32
    return %c0_i32, %c0_i32_0 : i32, i32
  }
  func.func @transform_4(%arg0: i32) -> (i32, i32) {
    %c0_i32 = arith.constant 0 : i32
    %c0_i32_0 = arith.constant 0 : i32
    %c0_i32_1 = arith.constant 0 : i32
    return %c0_i32, %c0_i32_0 : i32, i32
  }
  func.func @transform_5(%arg0: i32) -> (i32, i32) {
    %c0_i32 = arith.constant 0 : i32
    %c0_i32_0 = arith.constant 0 : i32
    return %arg0, %c0_i32 : i32, i32
  }
}

module attributes {stable_mosaic.version = 11 : i64} {
  func.func @deconv1x1_kernel(%arg0: i32, %arg1: i32, %arg2: memref<1x4x128xbf16, #tpu.memory_space<vmem>>, %arg3: memref<4x4xf32, #tpu.memory_space<vmem>>, %arg4: memref<4x1xf32, #tpu.memory_space<vmem>>, %arg5: memref<1x4x128xf32, #tpu.memory_space<vmem>>) attributes {dimension_semantics = [#tpu.dimension_semantics<parallel>, #tpu.dimension_semantics<parallel>], iteration_bounds = array<i64: 2, 2>, scalar_prefetch = 0 : i64, scratch_operands = 0 : i64, tpu.core_type = #tpu.core_type<tc>, window_params = [{transform_indices = @transform_0, window_bounds = array<i64: 1, 4, 128>}, {pipeline_mode = #tpu.pipeline_mode<synchronous>, transform_indices = @transform_1, window_bounds = array<i64: 4, 4>}, {pipeline_mode = #tpu.pipeline_mode<synchronous>, transform_indices = @transform_2, window_bounds = array<i64: 4, 1>}, {transform_indices = @transform_3, window_bounds = array<i64: 1, 4, 128>}]} {
    %c0 = arith.constant 0 : index
    %c0_0 = arith.constant 0 : index
    %c0_1 = arith.constant 0 : index
    %0 = vector.load %arg2[%c0, %c0_0, %c0_1] : memref<1x4x128xbf16, #tpu.memory_space<vmem>>, vector<1x4x128xbf16>
    %1 = vector.shape_cast %0 : vector<1x4x128xbf16> to vector<4x128xbf16>
    %2 = arith.extf %1 : vector<4x128xbf16> to vector<4x128xf32>
    %c0_2 = arith.constant 0 : index
    %c0_3 = arith.constant 0 : index
    %3 = vector.load %arg3[%c0_2, %c0_3] : memref<4x4xf32, #tpu.memory_space<vmem>>, vector<4x4xf32>
    %cst = arith.constant dense<0.000000e+00> : vector<4x128xf32>
    %4 = tpu.matmul %3, %2, %cst {dimension_numbers = #tpu.dot_dimension_numbers<[1], [0], [0], [1], [0, 0, 1, 1], [], []>} : vector<4x4xf32>, vector<4x128xf32>, vector<4x128xf32> -> vector<4x128xf32>
    %c0_4 = arith.constant 0 : index
    %c0_5 = arith.constant 0 : index
    %5 = vector.load %arg4[%c0_4, %c0_5] : memref<4x1xf32, #tpu.memory_space<vmem>>, vector<4x1xf32>
    %6 = vector.broadcast %5 : vector<4x1xf32> to vector<4x128xf32>
    %7 = arith.addf %4, %6 : vector<4x128xf32>
    %c0_6 = arith.constant 0 : index
    %c0_7 = arith.constant 0 : index
    %c0_8 = arith.constant 0 : index
    %8 = vector.load %arg5[%c0_6, %c0_7, %c0_8] : memref<1x4x128xf32, #tpu.memory_space<vmem>>, vector<1x4x128xf32>
    %9 = vector.shape_cast %8 : vector<1x4x128xf32> to vector<4x128xf32>
    %10 = vector.shape_cast %7 : vector<4x128xf32> to vector<1x4x128xf32>
    tpu.vector_store %arg5[%c0_6, %c0_7, %c0_8], %10 {strides = array<i32>} : memref<1x4x128xf32, #tpu.memory_space<vmem>>, vector<1x4x128xf32>,
    return
  }
  func.func @transform_0(%arg0: i32, %arg1: i32) -> (i32, i32, i32) {
    %c0_i32 = arith.constant 0 : i32
    %c0_i32_0 = arith.constant 0 : i32
    return %arg0, %c0_i32, %arg1 : i32, i32, i32
  }
  func.func @transform_1(%arg0: i32, %arg1: i32) -> (i32, i32) {
    %c0_i32 = arith.constant 0 : i32
    %c0_i32_0 = arith.constant 0 : i32
    %c0_i32_1 = arith.constant 0 : i32
    return %c0_i32, %c0_i32_0 : i32, i32
  }
  func.func @transform_2(%arg0: i32, %arg1: i32) -> (i32, i32) {
    %c0_i32 = arith.constant 0 : i32
    %c0_i32_0 = arith.constant 0 : i32
    %c0_i32_1 = arith.constant 0 : i32
    return %c0_i32, %c0_i32_0 : i32, i32
  }
  func.func @transform_3(%arg0: i32, %arg1: i32) -> (i32, i32, i32) {
    %c0_i32 = arith.constant 0 : i32
    %c0_i32_0 = arith.constant 0 : i32
    return %arg0, %c0_i32, %arg1 : i32, i32, i32
  }
}

</mosaic_0001>

<bundles_post_ra>
// kernel: _lambda_.2
= control target key start
LH: loop header
LB: loop body
LE: loop exit
PB: predicated region body
PF: predicated region fallthrough
CT: control target
= control target key end

     0   :  { %s536_s18 = smov 0   ;;  %s623_s0 = inlined_call_operand.vmem [shape: f32[16,64], index: 0, kind: input, shape index: {}]   ;;  %s624_s1 = inlined_call_operand.vmem [shape: bf16[64,128], index: 1, kind: input, shape index: {}]   ;;  %s625_s2 = inlined_call_operand.vmem [shape: f32[128,8], index: 2, kind: input, shape index: {}]   ;;  %s626_s3 = inlined_call_operand.vmem [shape: f32[8,128], index: 3, kind: input, shape index: {}]   ;;  %s627_s4 = inlined_call_operand.vmem [shape: f32[1,128], index: 4, kind: input, shape index: {}]   ;;  %s628_s5 = inlined_call_operand.vmem [shape: bf16[16,128], index: 5, kind: output, shape index: {}]  }
   0x1 LB: > { %s455_s19 = sadd.s32 4294967295, %s504_s18   ;;  %p459_p0 = scmp.ge.s32.totalorder %s504_s18, 1  ;;  %s504_s18 = sphi %s536_s18, %s15_s18  }
   0x2   : > { %p186_p1 = scmp.lt.s32.totalorder %s504_s18, 3 }
   0x4   : > { %p187_p2 = pnand %p459_p0, %p186_p1 }
   0x5   : > { %p212_p3 = scmp.lt.s32.totalorder (!%p187_p2), %s455_s19, 1 }
   0x6   : > { %190 = sbr.rel (%p187_p2) target bundleno = 458 (0x1ca), region = 40 }
   0xb   : > { %v486_v0 = vld [vmem:[%s624_s1 + $0x18] sm:$0xff]  ;;  %v286_v2 = vld [vmem:[%s625_s2 + $0x70] sm:$0xff]  ;;  %s630_s19 = smov (!%p212_p3, %s455_s19), 1  ;;  %v285_v4 = vld [vmem:[%s625_s2 + $0x68] sm:$0xff]  ;;  %vm255_vm0 = vcmask 523264   ;;  %vm345_vm3 = vcmask 64512  }
   0xc   : > { %v287_v1 = vld [vmem:[%s625_s2 + $0x78] sm:$0xff]  ;;  %263 = vmatpush.bf16.msra.mxu0 %v486_v0  ;;  %v485_v3 = vld [vmem:[%s624_s1 + $0x10] sm:$0xff]  ;;  %s460_s30 = sshll.u32 %s630_s19, 3  ;;  %v284_v5 = vld [vmem:[%s625_s2 + $0x60] sm:$0xff]  ;;  %s461_s22 = sshll.u32 %s630_s19, 2 }
   0xd   : > { %288 = vmatpush.msra.mxu1 %v287_v1  ;;  %310 = vmatpush.msra.mxu2 %v287_v1  ;;  %v484_v6 = vld [vmem:[%s624_s1 + $0x8] sm:$0xff]  ;;  %s215_s12 = scalar_lea.vmem %s623_s0, %s460_s30  ;;  %v283_v7 = vld [vmem:[%s625_s2 + $0x58] sm:$0xff]  ;;  %v282_v8 = vld [vmem:[%s625_s2 + $0x50] sm:$0xff]  ;;  %s219_s25 = scalar_lea.vmem %s628_s5, %s461_s22 }
   0xe   : > { %v483_v9 = vld [vmem:[%s624_s1] sm:$0xff]  ;;  %v281_v11 = vld [vmem:[%s625_s2 + $0x48] sm:$0xff]  ;;  %v279_v14 = vld [vmem:[%s625_s2 + $0x38] sm:$0xff] }
   0xf   : > { %289 = vmatpush.msra.mxu1 %v286_v2  ;;  %311 = vmatpush.msra.mxu2 %v286_v2  ;;  %v221_v10 = vld [vmem:[%s215_s12] sm:$0xff]  ;;  %v278_v15 = vld [vmem:[%s625_s2 + $0x30] sm:$0xff]  ;;  %v277_v16 = vld [vmem:[%s625_s2 + $0x28] sm:$0xff] }
  0x10   : > { %264 = vmatpush.bf16.msra.mxu0 %v485_v3  ;;  %v222_v12 = vpack.c.bf16 %v221_v10, %v221_v10  ;;  %v280_v13 = vld [vmem:[%s625_s2 + $0x40] sm:$0xff]  ;;  %v275_v18 = vld [vmem:[%s625_s2 + $0x18] sm:$0xff]  ;;  %v274_v19 = vld [vmem:[%s625_s2 + $0x10] sm:$0xff] }
  0x11   : > { %290 = vmatpush.msra.mxu1 %v285_v4  ;;  %312 = vmatpush.msra.mxu2 %v285_v4  ;;  %v276_v17 = vld [vmem:[%s625_s2 + $0x20] sm:$0xff]  ;;  %v273_v20 = vld [vmem:[%s625_s2 + $0x8] sm:$0xff] }
  0x12   : > { %v272_v21 = vld [vmem:[%s625_s2] sm:$0xff] }
  0x13   : > { %291 = vmatpush.msra.mxu1 %v284_v5  ;;  %313 = vmatpush.msra.mxu2 %v284_v5  ;;  %v344_v25 = vld [vmem:[%s626_s3] sm:$0xff] }
  0x14   : > { %265 = vmatpush.bf16.msra.mxu0 %v484_v6  ;;  %364 = vmatpush.msra.mxu3 %v344_v25  ;;  %v495_v43 = vld [vmem:[%s627_s4] ss:$0 sm:$0xff] }
  0x15   : > { %292 = vmatpush.msra.mxu1 %v283_v7  ;;  %314 = vmatpush.msra.mxu2 %v283_v7 }
  0x16   : > { %388 = vmatpush.msrb.mxu3 %v344_v25 }
  0x17   : > { %293 = vmatpush.msra.mxu1 %v282_v8  ;;  %315 = vmatpush.msra.mxu2 %v282_v8 }
  0x18   : > { %266 = vmatpush.bf16.msra.mxu0 %v483_v9 }
  0x19   : > { %294 = vmatpush.msra.mxu1 %v281_v11  ;;  %316 = vmatpush.msra.mxu2 %v281_v11 }
  0x1b   : > { %295 = vmatpush.msra.mxu1 %v280_v13  ;;  %478 = vmatmul.msk.bf16.vlgmr.msra.gmra.mxu0 %vm255_vm0, %v222_v12 }
  0x1c   : > { %317 = vmatpush.msra.mxu2 %v280_v13 }
  0x1d   : > { %296 = vmatpush.msra.mxu1 %v279_v14 }
  0x1e   : > { %318 = vmatpush.msra.mxu2 %v279_v14 }
  0x1f   : > { %297 = vmatpush.msra.mxu1 %v278_v15 }
  0x20   : > { %319 = vmatpush.msra.mxu2 %v278_v15 }
  0x21   : > { %298 = vmatpush.msra.mxu1 %v277_v16 }
  0x22   : > { %320 = vmatpush.msra.mxu2 %v277_v16 }
  0x23   : > { %299 = vmatpush.msra.mxu1 %v276_v17 }
  0x24   : > { %321 = vmatpush.msra.mxu2 %v276_v17 }
  0x25   : > { %300 = vmatpush.msra.mxu1 %v275_v18 }
  0x26   : > { %322 = vmatpush.msra.mxu2 %v275_v18 }
  0x27   : > { %301 = vmatpush.msra.mxu1 %v274_v19 }
  0x28   : > { %323 = vmatpush.msra.mxu2 %v274_v19 }
  0x29   : > { %302 = vmatpush.msra.mxu1 %v273_v20 }
  0x2a   : > { %324 = vmatpush.msra.mxu2 %v273_v20 }
  0x2b   : > { %303 = vmatpush.msra.mxu1 %v272_v21 }
  0x2c   : > { %325 = vmatpush.msra.mxu2 %v272_v21 }
  0x98   : > { %v268_v22 = vpop.f32.mrf.mxu0 }
  0x99   : > { %304 = vmatmul.f32.vlgmr.msra.gmra.mxu1 %v268_v22  ;;  %v309_v23 = vmul.f32 %v268_v22, %v268_v22 }
  0x9b   : > { %326 = vmatmul.f32.vlgmr.msra.gmra.mxu2 %v309_v23 }
  0xa0   : > { %v270_v24 = vpop.f32.mrf.mxu0 }
 0x116   : > { %v305_v26 = vpop.f32.mrf.mxu1 }
 0x117   : > { %v308_v27 = vmul.f32 0.0625, %v305_v26 }
 0x119   : > { %v331_v29 = vmul.f32 %v308_v27, %v308_v27 }
 0x11e   : > { %v327_v28 = vpop.f32.mrf.mxu2 }
 0x11f   : > { %v330_v30 = vmul.f32 0.0625, %v327_v28 }
 0x121   : > { %v332_v31 = vsub.f32 %v330_v30, %v331_v29 }
 0x123   : > { %v333_v32 = vadd.f32 1e-05, %v332_v31 }
 0x125   : > { %496 = vrsqrt.f32 %v333_v32  ;;  %vm340_vm2 = vweird.f32 %v333_v32 }
 0x12b   : > { %v497_v33 = vpop.eup %496 }
 0x12c   : > { %v335_v34 = vmul.f32 %v497_v33, %v333_v32  ;;  %vm341_vm1 = vweird.f32 %v497_v33 }
 0x12d   : > { %vm342_vm4 = vmor %vm340_vm2, %vm341_vm1 }
 0x12e   : > { %v336_v35 = vmul.f32 %v497_v33, %v335_v34 }
 0x130   : > { %v337_v36 = vmul.f32 0.5, %v336_v35 }
 0x132   : > { %v338_v37 = vsub.f32 1.5, %v337_v36 }
 0x134   : > { %v339_v38 = vmul.f32 %v497_v33, %v338_v37 }
 0x136   : > { %v343_v39 = vsel %vm342_vm4, %v497_v33, %v339_v38 }
 0x137   : > { %479 = vmatmul.msk.f32.vlgmr.msra.gmra.mxu3 %vm345_vm3, %v343_v39  ;;  %v369_v40 = vmul.f32 %v343_v39, %v308_v27 }
 0x13f   : > { %480 = vmatmul.msk.f32.vlgmr.msrb.gmra.mxu3 %vm345_vm3, %v369_v40 }
 0x1ba   : > { %v366_v41 = vpop.f32.mrf.mxu3 }
 0x1bb   : > { %v393_v42 = vmul.f32 %v366_v41, %v268_v22 }
 0x1c2   : > { %v390_v44 = vpop.f32.mrf.mxu3 }
 0x1c3   : > { %v394_v45 = vsub.f32 %v393_v42, %v390_v44 }
 0x1c5   : > { %v399_v46 = vadd.f32 %v495_v43, %v394_v45 }
 0x1c7   : > { %v400_v47 = vpack.c.bf16 %v399_v46, %v399_v46 }
 0x1c9   : > { %401 = vst [vmem:[%s219_s25] sm:$0xf] %v400_v47 }
 0x1ca PF: > { %s15_s18 = sadd.s32 1, %s504_s18  }
 0x1cb   : > { %p12_p4 = scmp.ge.s32.totalorder %s15_s18, 4  }
 0x1cd   :  { %14 = sbr.rel (!%p12_p4) target bundleno = 1 (0x1), region = 70 }

// kernel: _lambda_.3
= control target key start
LH: loop header
LB: loop body
LE: loop exit
PB: predicated region body
PF: predicated region fallthrough
CT: control target
= control target key end

     0   :  { %s442_s12 = smov 0   ;;  %s444_s13 = smov 0   ;;  %s499_s0 = inlined_call_operand.vmem [shape: bf16[2,4,256], index: 0, kind: input, shape index: {}]   ;;  %s500_s1 = inlined_call_operand.vmem [shape: f32[4,4], index: 1, kind: input, shape index: {}]   ;;  %s501_s2 = inlined_call_operand.vmem [shape: f32[4,1], index: 2, kind: input, shape index: {}]   ;;  %s502_s3 = inlined_call_operand.vmem [shape: f32[2,4,256], index: 3, kind: output, shape index: {}]  }
   0x1   :  { %s446_s14 = smov 0   ;;  %s448_s15 = smov 0  }
   0x2   :  { %s450_s16 = smov 0  }
   0x3 LB: > { %s22_s17 = sadd.s32 1, %s411_s14  ;;  %s25_s18 = sadd.s32 1, %s415_s15  ;;  %s419_s16 = sphi %s450_s16, %s13_s16   ;;  %s415_s15 = sphi %s448_s15, %s506_s15   ;;  %s411_s14 = sphi %s446_s14, %s505_s14   ;;  %s407_s13 = sphi %s444_s13, %s504_s13   ;;  %s403_s12 = sphi %s442_s12, %s503_s12  }
   0x4   : > { %p23_p0 = scmp.ge.s32.totalorder %s22_s17, 2  ;;  %p330_p1 = scmp.ge.s32.totalorder %s419_s16, 1 }
   0x5   : > { %p156_p2 = scmp.lt.s32.totalorder %s419_s16, 5 }
   0x6   : > { %s508_s17 = smov (%p23_p0, %s22_s17), 0  ;;  %s510_s18 = smov (!%p23_p0, %s25_s18), %s415_s15 }
   0x7   : > { %p157_p3 = pnand %p330_p1, %p156_p2  ;;  %p27_p4 = scmp.ge.s32.totalorder %s510_s18, 2 }
   0x8   : > { %p186_p5 = scmp.lt.s32.totalorder (!%p157_p3), %s407_s13, 1  ;;  %p188_p6 = scmp.lt.s32.totalorder (!%p157_p3), %s403_s12, 1 }
   0x9   : > { %s512_s18 = smov (%p27_p4, %s510_s18), 0  ;;  %160 = sbr.rel (%p157_p3) target bundleno = 152 (0x98), region = 32 }
   0xe   : > { %v205_v0 = vld [vmem:[%s501_s2] sm:$0xf]  ;;  %s514_s13 = smov (!%p186_p5, %s407_s13), 1  ;;  %v421_v1 = vmov 0   ;;  %s516_s12 = smov (!%p188_p6, %s403_s12), 1  ;;  %vm215_vm0 = vcmask 1043456  }
   0xf   : > { %380 = vset.pattern.permute.xlu0 %v421_v1  ;;  %s331_s21 = sshll.u32 %s514_s13, 1  ;;  %v204_v4 = vld [vmem:[%s500_s1] sm:$0xf]  ;;  %vm211_vm1 = vcmask 31744  }
  0x10   : > { %208 = vperm.xlu0 %380, %v205_v0   ;;  %s191_s22 = sadd.s32 %s331_s21, %s516_s12 }
  0x11   : > { %s332_s23 = sshll.u32 %s191_s22, 1  ;;  %s334_s29 = sshll.u32 %s191_s22, 2 }
  0x12   : > { %s193_s26 = scalar_lea.vmem %s499_s0, %s332_s23  ;;  %s201_s5 = scalar_lea.vmem %s502_s3, %s334_s29 }
  0x13   : > { %v202_v2 = vld [vmem:[%s193_s26] sm:$0x3] }
  0x14   : > { %v203_v3 = vunpack.c.l.bf16 %v202_v2 }
  0x16   : > { %335 = vmatpush.msk.msra.mxu0 %vm215_vm0, %v203_v3 }
  0x17   : > { %336 = vmatmul.msk.f32.vlgmr.msra.gmra.mxu0 %vm211_vm1, %v204_v4 }
  0x82   : > { %v209_v5 = vpop.permute.xlu0 %208 }
  0x94   : > { %v236_v6 = vpop.f32.mrf.mxu0 }
  0x95   : > { %v237_v7 = vadd.f32 %v236_v6, %v209_v5 }
  0x97   : > { %239 = vst [vmem:[%s201_s5] sm:$0xf] %v237_v7 }
  0x98 PF: > { %s13_s16 = sadd.s32 1, %s419_s16   ;;  %s503_s12 = smov %s411_s14 }
  0x99   : > { %p10_p7 = scmp.ge.s32.totalorder %s13_s16, 6   ;;  %s504_s13 = smov %s415_s15 }
  0x9a   : > { %s505_s14 = smov %s508_s17  ;;  %s506_s15 = smov %s512_s18 }
  0x9b   :  { %12 = sbr.rel (!%p10_p7) target bundleno = 3 (0x3), region = 62 }

</bundles_post_ra>
